<compile_context>
chip_gen: v7x
topology: tpu7x:2x2x1
jax: 0.10.0
libtpu: 0.0.40
codegen_flags: <defaults>
</compile_context>

<pallas_src>
import jax
import jax.numpy as jnp
from jax.experimental import pallas as pl
from jax.experimental.pallas import tpu as pltpu


def _linear1x1_kernel(x_ref, w_ref, b_ref, o_ref):
    # x_ref: [C_in, TM]   one batch's spatial tile (node*length on lanes), bf16
    # w_ref: [C_out, C_in] bf16 (resident across grid)
    # b_ref: [C_out, 1]    f32  (resident across grid)
    # o_ref: [C_out, TM]   f32
    y = jnp.dot(w_ref[...], x_ref[...], preferred_element_type=jnp.float32)
    o_ref[...] = (y + b_ref[...]).astype(o_ref.dtype)


def linear1x1_forward(x, weight, bias, *, tm=1024):
    """x: [B, C_in, N, L], weight: [C_out, C_in, 1, 1], bias: [C_out]."""
    B, C_in, N, L = x.shape
    C_out = weight.shape[0]
    M = N * L

    # Lane-dense tiling: TM is a multiple of 128; pad the flattened spatial
    # axis up to a multiple of TM so every block (including the last) is a
    # full, unmasked 128-lane-aligned tile.
    m_pad128 = pl.cdiv(M, 128) * 128
    TM = min(tm, m_pad128)                 # both are multiples of 128
    M_pad = pl.cdiv(M, TM) * TM

    x2 = x.reshape(B, C_in, M)             # contiguous -> free reshape
    if M_pad != M:
        x2 = jnp.pad(x2, ((0, 0), (0, 0), (0, M_pad - M)))
    x2 = x2.astype(jnp.bfloat16)           # halve HBM traffic (mem-bound kernel)
    w2 = weight.reshape(C_out, C_in).astype(jnp.bfloat16)
    b2 = bias.reshape(C_out, 1).astype(jnp.float32)

    # Per-step VMEM (double-buffered): 2*(C_in*TM*2B + C_out*TM*4B) + weight
    # e.g. C=32, TM=1024 -> ~0.4 MiB; comfortably under v5e's 16 MiB scoped
    # default and v7x's 64 MiB physical VMEM, so no vmem_limit override needed.
    out = pl.pallas_call(
        _linear1x1_kernel,
        out_shape=jax.ShapeDtypeStruct((B, C_out, M_pad), jnp.float32),
        grid=(B, M_pad // TM),
        in_specs=[
            pl.BlockSpec((None, C_in, TM), lambda b, m: (b, 0, m)),   # x tile
            pl.BlockSpec((C_out, C_in), lambda b, m: (0, 0)),         # weight (resident)
            pl.BlockSpec((C_out, 1), lambda b, m: (0, 0)),            # bias (resident)
        ],
        out_specs=pl.BlockSpec((None, C_out, TM), lambda b, m: (b, 0, m)),
        compiler_params=pltpu.CompilerParams(
            dimension_semantics=("parallel", "parallel")),             # v7x megacore
    )(x2, w2, b2)

    if M_pad != M:
        out = out[:, :, :M]
    return out.reshape(B, C_out, N, L)


def _reference(x, weight, bias):
    y = jnp.einsum('bcnl,oc->bonl', x, weight[:, :, 0, 0])
    return y + bias[None, :, None, None]


if __name__ == "__main__":
    B, C_in, C_out, N, L = 2, 32, 32, 16, 8
    key = jax.random.PRNGKey(0)
    kx, kw, kb = jax.random.split(key, 3)

    x = jax.random.normal(kx, (B, C_in, N, L), jnp.float32)
    # Conv2d(kernel_size=1) parameters (PyTorch-style uniform init bounds).
    bound = 1.0 / (C_in ** 0.5)
    weight = jax.random.uniform(kw, (C_out, C_in, 1, 1), jnp.float32, -bound, bound)
    bias = jax.random.uniform(kb, (C_out,), jnp.float32, -bound, bound)

    out = linear1x1_forward(x, weight, bias)
    out = jax.block_until_ready(out)

    ref = _reference(x, weight, bias)
    assert out.shape == (B, C_out, N, L)
    # bf16 inputs + f32 MXU accumulation -> relax tolerance vs f32 reference.
    assert jnp.allclose(out, ref, rtol=2e-2, atol=2e-2), "mismatch vs reference"

    print("KERNEL_OK")
</pallas_src>

<mosaic_0001>
module attributes {stable_mosaic.version = 11 : i64} {
  func.func @_linear1x1_kernel(%arg0: i32, %arg1: i32, %arg2: memref<1x32x128xbf16, #tpu.memory_space<vmem>>, %arg3: memref<32x32xbf16, #tpu.memory_space<vmem>>, %arg4: memref<32x1xf32, #tpu.memory_space<vmem>>, %arg5: memref<1x32x128xf32, #tpu.memory_space<vmem>>) attributes {dimension_semantics = [#tpu.dimension_semantics<parallel>, #tpu.dimension_semantics<parallel>], iteration_bounds = array<i64: 2, 1>, scalar_prefetch = 0 : i64, scratch_operands = 0 : i64, tpu.core_type = #tpu.core_type<tc>, window_params = [{transform_indices = @transform_0, window_bounds = array<i64: 1, 32, 128>}, {pipeline_mode = #tpu.pipeline_mode<synchronous>, transform_indices = @transform_1, window_bounds = array<i64: 32, 32>}, {pipeline_mode = #tpu.pipeline_mode<synchronous>, transform_indices = @transform_2, window_bounds = array<i64: 32, 1>}, {transform_indices = @transform_3, window_bounds = array<i64: 1, 32, 128>}]} {
    %c0 = arith.constant 0 : index
    %c0_0 = arith.constant 0 : index
    %0 = vector.load %arg3[%c0, %c0_0] : memref<32x32xbf16, #tpu.memory_space<vmem>>, vector<32x32xbf16>
    %c0_1 = arith.constant 0 : index
    %c0_2 = arith.constant 0 : index
    %c0_3 = arith.constant 0 : index
    %1 = vector.load %arg2[%c0_1, %c0_2, %c0_3] : memref<1x32x128xbf16, #tpu.memory_space<vmem>>, vector<1x32x128xbf16>
    %2 = vector.shape_cast %1 : vector<1x32x128xbf16> to vector<32x128xbf16>
    %cst = arith.constant dense<0.000000e+00> : vector<32x128xf32>
    %3 = tpu.matmul %0, %2, %cst {dimension_numbers = #tpu.dot_dimension_numbers<[1], [0], [0], [1], [0, 0, 1, 1], [], []>} : vector<32x32xbf16>, vector<32x128xbf16>, vector<32x128xf32> -> vector<32x128xf32>
    %c0_4 = arith.constant 0 : index
    %c0_5 = arith.constant 0 : index
    %4 = vector.load %arg4[%c0_4, %c0_5] : memref<32x1xf32, #tpu.memory_space<vmem>>, vector<32x1xf32>
    %5 = vector.broadcast %4 : vector<32x1xf32> to vector<32x128xf32>
    %6 = arith.addf %3, %5 : vector<32x128xf32>
    %c0_6 = arith.constant 0 : index
    %c0_7 = arith.constant 0 : index
    %c0_8 = arith.constant 0 : index
    %7 = vector.load %arg5[%c0_6, %c0_7, %c0_8] : memref<1x32x128xf32, #tpu.memory_space<vmem>>, vector<1x32x128xf32>
    %8 = vector.shape_cast %7 : vector<1x32x128xf32> to vector<32x128xf32>
    %9 = vector.shape_cast %6 : vector<32x128xf32> to vector<1x32x128xf32>
    tpu.vector_store %arg5[%c0_6, %c0_7, %c0_8], %9 {strides = array<i32>} : memref<1x32x128xf32, #tpu.memory_space<vmem>>, vector<1x32x128xf32>,
    return
  }
  func.func @transform_0(%arg0: i32, %arg1: i32) -> (i32, i32, i32) {
    %c0_i32 = arith.constant 0 : i32
    %c0_i32_0 = arith.constant 0 : i32
    return %arg0, %c0_i32, %arg1 : i32, i32, i32
  }
  func.func @transform_1(%arg0: i32, %arg1: i32) -> (i32, i32) {
    %c0_i32 = arith.constant 0 : i32
    %c0_i32_0 = arith.constant 0 : i32
    %c0_i32_1 = arith.constant 0 : i32
    return %c0_i32, %c0_i32_0 : i32, i32
  }
  func.func @transform_2(%arg0: i32, %arg1: i32) -> (i32, i32) {
    %c0_i32 = arith.constant 0 : i32
    %c0_i32_0 = arith.constant 0 : i32
    %c0_i32_1 = arith.constant 0 : i32
    return %c0_i32, %c0_i32_0 : i32, i32
  }
  func.func @transform_3(%arg0: i32, %arg1: i32) -> (i32, i32, i32) {
    %c0_i32 = arith.constant 0 : i32
    %c0_i32_0 = arith.constant 0 : i32
    return %arg0, %c0_i32, %arg1 : i32, i32, i32
  }
}

</mosaic_0001>

<bundles_post_ra>
// kernel: tpu_custom_call.1
= control target key start
LH: loop header
LB: loop body
LE: loop exit
PB: predicated region body
PF: predicated region fallthrough
CT: control target
= control target key end

     0   :  { %8 = vsyncpa [#allocation3], 0  ;;  %s847_s0 = inlined_call_operand.vmem [shape: bf16[2,32,128], index: 0, kind: input, shape index: {}]   ;;  %s848_s1 = inlined_call_operand.hbm [shape: bf16[32,32], index: 1, kind: input, shape index: {}]   ;;  %s849_s2 = inlined_call_operand.vmem [shape: f32[32,1], index: 2, kind: input, shape index: {}]   ;;  %s850_s3 = inlined_call_operand.hbm [shape: f32[2,32,128], index: 3, kind: output, shape index: {}]  }
   0x1   :  { %9 = vsyncpa [#allocation4], 0 }
   0x2   :  { %11 = vsyncpa [#allocation4 + $0x1], 0  ;;  %s680_s12 = smov 0   ;;  %s682_s13 = smov 0  }
   0x3   :  { %s684_s14 = smov 0   ;;  %s686_s15 = smov 0  }
   0x4   :  { %s688_s16 = smov 0   ;;  %s690_s17 = smov 0  }
   0x5 LB: > { %s429_s18 = sadd.s32 4294967295, %s651_s17   ;;  %s430_s19 = sadd.s32 4294967294, %s651_s17   ;;  %s651_s17 = sphi %s690_s17, %s17_s17   ;;  %s647_s16 = sphi %s688_s16, %s868_s16   ;;  %s643_s15 = sphi %s686_s15, %s867_s15   ;;  %s639_s14 = sphi %s684_s14, %s866_s14   ;;  %s635_s13 = sphi %s682_s13, %s865_s13   ;;  %s631_s12 = sphi %s680_s12, %s864_s12  }
   0x6   : > { %s29_s20 = sadd.s32 1, %s647_s16  ;;  %s108_s21 = sadd.s32 1, %s639_s14 }
   0x7   : > { %p31_p0 = scmp.ge.s32.totalorder %s29_s20, 2  ;;  %p118_p1 = scmp.ne.s32.totalorder %s639_s14, %s635_s13 }
   0x8   : > { %p119_p2 = scmp.eq.s32.totalorder %s429_s18, 1  ;;  %p124_p3 = scmp.ne.s32.totalorder %s635_s13, %s631_s12 }
   0x9   : > { %s870_s20 = smov (%p31_p0, %s29_s20), 0  ;;  %p125_p5 = scmp.eq.s32.totalorder %s430_s19, 1 }
   0xa   : > { %p720_p4 = por %p119_p2, %p118_p1  ;;  %s103_s23 = ssub.s32 %s647_s16, %s870_s20 }
   0xb   : > { %p431_p6 = scmp.ge.s32.totalorder %s651_s17, 1  ;;  %p106_p7 = scmp.eq.s32.totalorder %s103_s23, 0 }
   0xc   : > { %s855_s22 = scalar_select %p720_p4, 1, 0 }
   0xd   : > { %p727_p8 = por %p125_p5, %p124_p3  ;;  %p132_p9 = scmp.lt.s32.totalorder %s651_s17, 3 }
   0xe   : > { %s733_s25 = scalar_select %p106_p7, %s639_s14, %s108_s21  }
   0xf   : > { %s856_s24 = scalar_select %p727_p8, 1, 0 }
  0x10   : > { %p735_p10 = pnand %p431_p6, %p132_p9  ;;  %p739_p11 = scmp.eq.s32.totalorder %s429_s18, 0 }
  0x11   : > { %s653_s28 = smov [#allocation2]   ;;  %s541_s6 = scalar_lea.hbm %s848_s1, 256 }
  0x12   : > { %s857_s26 = scalar_select %p735_p10, 1, 0 }
  0x13   : > { %s858_s27 = scalar_select %p739_p11, 1, 0 }
  0x14   : > { %p470_p12 = pneg %p735_p10  ;;  %s144_s29 = sshll.u32 %s653_s28, 4  ;;  %s145_s29 = int_to_ptr.vmem [resolvable:$true] %s144_s29 }
  0x15   : > { %p542_p0 = scmp.ne.s32.totalorder %s848_s1, %s541_s6  ;;  %p548_p5 = scmp.lt.u32.totalorder %s541_s6, %s848_s1 }
  0x16   : > { %p747_p13 = pnand %p739_p11, %p470_p12 }
  0x18   : > { %p543_p1 = pneg %p747_p13 }
  0x1a   : > { %p544_p2 = pnand %p543_p1, %p542_p0 }
  0x1c   : > { %p545_p3 = pneg %p544_p2 }
  0x1e   : > { %p550_p6 = pnand %p548_p5, %p545_p3 }
  0x20   : > { %553 = shalt.err (!%p550_p6)
}
  0x21   : > { %s554_s11 = scalar_lea.vmem %s145_s29, 256  ;;  %p562_p8 = scmp.lt.s32.totalorder %s145_s29, %s145_s29 }
  0x22   : > { %p555_p7 = scmp.ne.s32.totalorder %s145_s29, %s554_s11  ;;  %p563_p4 = scmp.lt.s32.totalorder %s554_s11, %s554_s11 }
  0x24   : > { %p557_p9 = pnand %p555_p7, %p543_p1  ;;  %p564_p11 = por %p563_p4, %p562_p8 }
  0x26   : > { %p558_p12 = pneg %p557_p9 }
  0x28   : > { %p565_p10 = pnand %p564_p11, %p558_p12 }
  0x2a   : > { %568 = shalt.err (!%p565_p10)
}
  0x2b   : > { %s654_s18 = smov 64   ;;  %s655_s19 = smov 4  }
  0x2c   : > { %473 = dma.hbm_to_vmem [thread:$0]  (!%p747_p13), %s848_s1, 256, %s145_s29, [#allocation3], %s654_s18, %s654_s18, %s655_s19  }
  0x2d   : > { %p860_p0 = scmp.ne.s32.totalorder %s857_s26, 0 }
  0x2e   : > { %p861_p2 = scmp.ne.s32.totalorder (!%p860_p0), %s858_s27, 0 }
  0x2f   : > { %174 = sbr.rel (%p860_p0) target bundleno = 302 (0x12e), region = 32 }
  0x36   : > { %622 = dma.done.wait (%p861_p2), [#allocation3], 256  }
  0x37   : > { %624 = vsyncadd (%p861_p2), [#allocation3], 4294967040  ;;  %p201_p4 = scmp.lt.s32.totalorder %s643_s15, 1  ;;  %v656_v0 = vmov 0   ;;  %vm264_vm0 = vcmask 261120   ;;  %v539_v3 = vld [vmem:[#allocation2] sm:$0xff]  }
  0x38   : > { %536 = vset.pattern.permute.xlu1 %v656_v0  ;;  %535 = vset.pattern.permute.xlu0 %v656_v0  ;;  %v220_v4 = vld [vmem:[%s849_s2 + $0x10] sm:$0xff]  ;;  %v218_v5 = vld [vmem:[%s849_s2] sm:$0xff]  ;;  %v540_v6 = vld [vmem:[#allocation2 + $0x8] sm:$0xff]   ;;  %s198_s18 = sand.u32 1, %s635_s13   ;;  %p862_p10 = scmp.ne.s32.totalorder %s855_s22, 0 }
  0x39   : > { %s202_s28 = scalar_select %p201_p4, %s643_s15, 1  ;;  %460 = vmatprep.mubr.msk.bf16.mxu0 %vm264_vm0, %v539_v3  ;;  %234 = vperm.xlu1 %536, %v220_v4   ;;  %v221_v7 = vld [vmem:[%s849_s2 + $0x18] sm:$0xff]  ;;  %v219_v8 = vld [vmem:[%s849_s2 + $0x8] sm:$0xff] }
  0x3a   : > { %224 = vperm.xlu0 %535, %v218_v5   ;;  %s436_s19 = sshll.u32 %s198_s18, 5  ;;  %s657_s26 = smov [#allocation5]  }
  0x3b   : > { %s450_s30 = sshll.u32 %s202_s28, 4  ;;  %s200_s21 = scalar_lea.vmem [#allocation5], %s436_s19 }
  0x3c   : > { %s208_s29 = scalar_lea.vmem %s847_s0, %s450_s30  ;;  %s339_s23 = sshll.u32 %s200_s21, 4  ;;  %s794_s23 = int_to_ptr.vmem [resolvable:$true] %s339_s23 }
  0x3d   : > { %v537_v1 = vld [vmem:[%s208_s29] sm:$0xff]   ;;  %v538_v2 = vld [vmem:[%s208_s29 + $0x8] sm:$0xff]   ;;  %239 = vperm.xlu1 %536, %v221_v7   ;;  %s451_s28 = sshll.u32 %s643_s15, 9  ;;  %s801_s15 = scalar_lea.sflag [#allocation4], %s198_s18 }
  0x3e   : > { %456 = vmatprep.subr.bf16.mxu0 %v537_v1  ;;  %229 = vperm.xlu0 %535, %v219_v8   ;;  %s799_s5 = scalar_lea.hbm %s850_s3, %s451_s28  ;;  %s569_s29 = scalar_lea.vmem %s794_s23, 512 }
  0x3f   : > { %457 = vmatpush3.bf16.msra.mxu0 %v537_v1  ;;  %p570_p8 = scmp.ne.s32.totalorder %s794_s23, %s569_s29  ;;  %s573_s27 = sshll.u32 %s657_s26, 4  ;;  %s574_s27 = int_to_ptr.vmem [resolvable:$false] %s573_s27 }
  0x40   : > { %458 = vmatprep.subr.bf16.mxu0 %v538_v2  ;;  %s575_s6 = scalar_lea.vmem %s574_s27, 1024  ;;  %p576_p1 = scmp.lt.s32.totalorder %s794_s23, %s574_s27 }
  0x41   : > { %p571_p11 = pnand %p570_p8, %p862_p10  ;;  %p577_p3 = scmp.lt.s32.totalorder %s575_s6, %s569_s29 }
  0x43   : > { %459 = vmatpush3.bf16.msra.mxu0 %v538_v2  ;;  %p572_p13 = pneg %p571_p11  ;;  %p578_p5 = por %p577_p3, %p576_p1 }
  0x45   : > { %p579_p6 = pnand %p578_p5, %p572_p13 }
  0x46   : > { %461 = vmatmul.mubr.msk.bf16.vlgmr.msra.gmra.mrb[0].mxu0 %vm264_vm0, %v540_v6 }
  0xb8   : > { %v235_v9 = vpop.permute.xlu1 %234 }
  0xb9   : > { %v225_v10 = vpop.permute.xlu0 %224 }
  0xbc   : > { %v240_v14 = vpop.permute.xlu1 %239 }
  0xbd   : > { %v230_v17 = vpop.permute.xlu0 %229 }
 0x119   : > { %v462_v11 = vpop.f32.mrb[0].mxu0 }
 0x11a   : > { %v314_v12 = vadd.f32 %v462_v11, %v235_v9  ;;  %v305_v13 = vpop.f32.mrb[1].mxu0 }
 0x11b   : > { %v306_v15 = vadd.f32 %v305_v13, %v225_v10  ;;  %v463_v16 = vpop.f32.mrb[2].mxu0 }
 0x11c   : > { %322 = vst [vmem:[%s200_s21 + $0x10] sm:$0xff] %v314_v12  ;;  %v317_v18 = vadd.f32 %v463_v16, %v240_v14  ;;  %v308_v19 = vpop.f32.mrb[3].mxu0 }
 0x11d   : > { %320 = vst [vmem:[%s200_s21] sm:$0xff] %v306_v15  ;;  %v309_v20 = vadd.f32 %v308_v19, %v230_v17 }
 0x11e   : > { %323 = vst [vmem:[%s200_s21 + $0x18] sm:$0xff] %v317_v18 }
 0x11f   : > { %321 = vst [vmem:[%s200_s21 + $0x8] sm:$0xff] %v309_v20 }
 0x120   : > { %582 = shalt.err (!%p579_p6)
}
 0x121   : > { %s583_s7 = scalar_lea.hbm %s799_s5, 512  ;;  %s587_s10 = scalar_lea.hbm %s850_s3, 1024 }
 0x122   : > { %p584_p7 = scmp.ne.s32.totalorder %s799_s5, %s583_s7  ;;  %p588_p0 = scmp.lt.u32.totalorder %s799_s5, %s850_s3 }
 0x123   : > { %p589_p2 = scmp.lt.u32.totalorder %s587_s10, %s583_s7  ;;  %p591_p8 = scmp.lt.u32.totalorder %s583_s7, %s799_s5 }
 0x124   : > { %p585_p9 = pnand %p584_p7, %p862_p10 }
 0x125   : > { %p590_p4 = por %p589_p2, %p588_p0 }
 0x126   : > { %p586_p12 = pneg %p585_p9 }
 0x127   : > { %p592_p11 = por %p591_p8, %p590_p4 }
 0x129   : > { %p593_p13 = pnand %p592_p11, %p586_p12 }
 0x12b   : > { %596 = shalt.err (!%p593_p13)
}
 0x12c   : > { %s658_s19 = smov 128   ;;  %s659_s21 = smov 8  }
 0x12d   : > { %468 = dma.vmem_to_hbm [thread:$0]  (%p862_p10), %s794_s23, 512, %s799_s5, %s801_s15, %s658_s19, %s658_s19, %s659_s21  }
 0x12e PF: > { %p480_p1 = scmp.ge.s32.totalorder %s651_s17, 2  ;;  %s354_s28 = sand.u32 1, %s631_s12  }
 0x12f   : > { %p863_p3 = scmp.ne.s32.totalorder %s856_s24, 0  ;;  %s355_s30 = scalar_lea.sflag [#allocation4], %s354_s28 }
 0x131   : > { %p475_p5 = pnand %p480_p1, %p863_p3 }
 0x133   : > { %626 = dma.done.wait (!%p475_p5), %s355_s30, 512  }
 0x134   : > { %628 = vsyncadd (!%p475_p5), %s355_s30, 4294966784  ;;  %s17_s17 = sadd.s32 1, %s651_s17   ;;  %s864_s12 = smov %s635_s13 }
 0x135   : > { %p14_p6 = scmp.ge.s32.totalorder %s17_s17, 4   ;;  %s865_s13 = smov %s639_s14 }
 0x136   : > { %s866_s14 = smov %s733_s25  ;;  %s867_s15 = smov %s647_s16 }
 0x137   : > { %s868_s16 = smov %s870_s20  ;;  %16 = sbr.rel (!%p14_p6) target bundleno = 5 (0x5), region = 72 }
 0x13e   :  { %360 = vsyncpa [#allocation3], 1 }
 0x13f   :  { %362 = vsyncpa [#allocation3 + $0x1], 1 }
 0x140   :  { %363 = vsyncpa [#allocation4], 1 }
 0x141   :  { %365 = vsyncpa [#allocation4 + $0x1], 1 }

</bundles_post_ra>
